<compile_context>
chip_gen: v6e
topology: v6e:2x2x1
jax: 0.10.0
libtpu: 0.0.40
codegen_flags: <defaults>
</compile_context>

<pallas_src>
import functools

import jax
import jax.numpy as jnp
from jax.experimental import pallas as pl
from jax.experimental.pallas import tpu as pltpu


# ----------------------------------------------------------------------------
# helpers
# ----------------------------------------------------------------------------
def _round_up(x, m):
    return (x + m - 1) // m * m


def _pick_tile_rows(mp, cap=512):
    for cand in (512, 256, 128, 64, 32, 16, 8):
        if cand <= cap and mp % cand == 0:
            return cand
    return mp


def _compiler_params(sem, vmem_bytes):
    # Explicit scoped-VMEM budget: at least 8 MiB, capped at 48 MiB so it also
    # fits v7x's 64 MiB physical VMEM.
    limit = int(min(48 * 2**20, max(8 * 2**20, 2 * vmem_bytes)))
    return pltpu.CompilerParams(dimension_semantics=sem, vmem_limit_bytes=limit)


def adopt_weight(weight, global_step, threshold=0, value=0.0):
    # NOTE: global_step / threshold are Python scalars here (host control flow,
    # same as the reference); do not trace them under jit.
    if global_step < threshold:
        weight = value
    return weight


# ----------------------------------------------------------------------------
# Pallas kernel 1: M/K-tiled bf16 GEMM, f32 accumulation, with either a fused
# bias(+LeakyReLU) epilogue (configurable output dtype) or fused per-column
# BatchNorm statistics epilogue.
# ----------------------------------------------------------------------------
def _gemm_bias_act_kernel(apply_act):
    def kernel(a_ref, b_ref, bias_ref, o_ref, acc_ref):
        k = pl.program_id(1)

        @pl.when(k == 0)
        def _init():
            acc_ref[...] = jnp.zeros_like(acc_ref)

        acc_ref[...] += jnp.dot(a_ref[...], b_ref[...],
                                preferred_element_type=jnp.float32)

        @pl.when(k == pl.num_programs(1) - 1)
        def _finalize():
            y = acc_ref[...] + bias_ref[...]
            if apply_act:
                y = jnp.where(y >= 0.0, y, 0.2 * y)  # LeakyReLU(0.2), f32 epilogue
            o_ref[...] = y.astype(o_ref.dtype)

    return kernel


def _gemm_stats_kernel(a_ref, b_ref, o_ref, sum_ref, sq_ref):
    k = pl.program_id(1)

    @pl.when(k == 0)
    def _init():
        o_ref[...] = jnp.zeros_like(o_ref)

    o_ref[...] += jnp.dot(a_ref[...], b_ref[...],
                          preferred_element_type=jnp.float32)

    @pl.when(k == pl.num_programs(1) - 1)
    def _finalize():
        y = o_ref[...]
        z8 = jnp.zeros(sum_ref.shape, jnp.float32)        # broadcast to (8, Np)
        sum_ref[...] = jnp.sum(y, axis=0, keepdims=True) + z8
        sq_ref[...] = jnp.sum(y * y, axis=0, keepdims=True) + z8


def _gemm_shapes(M, K, N):
    TM = 256
    Mp = _round_up(max(M, 16), 16)       # 16: bf16 sublane packing of the A tile
    if Mp <= TM:
        TM = Mp
    else:
        Mp = _round_up(Mp, TM)
    Np = _round_up(max(N, 128), 128)
    Kp = _round_up(max(K, 128), 128)     # adaptive TK: tiny K not padded to 512
    if Kp <= 512:
        TK = Kp
    else:
        TK = 512
        Kp = _round_up(K, TK)
    return Mp, Kp, Np, TM, TK


def conv_gemm_pallas(a, b, bias=None, apply_act=False, emit_stats=False,
                     out_dtype=jnp.float32):
    """GEMM with bf16 MXU operands and f32 accumulation.

    a:(M,K), b:(K,N). Returns the zero-padded (Mp,Np) output in `out_dtype`; if
    emit_stats=True the output is f32 and per-column sum / sum-of-squares (over
    the M real rows) are also returned, fused into the GEMM epilogue (BN stats).
    """
    M, K = a.shape
    _, N = b.shape
    Mp, Kp, Np, TM, TK = _gemm_shapes(M, K, N)

    a_p = jnp.zeros((Mp, Kp), jnp.bfloat16).at[:M, :K].set(a.astype(jnp.bfloat16))
    b_p = jnp.zeros((Kp, Np), jnp.bfloat16).at[:K, :N].set(b.astype(jnp.bfloat16))

    grid = (Mp // TM, Kp // TK)
    a_spec = pl.BlockSpec((TM, TK), lambda m, k: (m, k))
    b_spec = pl.BlockSpec((TK, Np), lambda m, k: (k, 0))
    o_spec = pl.BlockSpec((TM, Np), lambda m, k: (m, 0))   # resident across K

    if emit_stats:
        vmem_bytes = (2 * TM * TK * 2 + 2 * TK * Np * 2 + 2 * TM * Np * 4
                      + 4 * 8 * Np * 4)
        n_mt = Mp // TM
        out_p, psum, psq = pl.pallas_call(
            _gemm_stats_kernel,
            out_shape=(jax.ShapeDtypeStruct((Mp, Np), jnp.float32),
                       jax.ShapeDtypeStruct((n_mt * 8, Np), jnp.float32),
                       jax.ShapeDtypeStruct((n_mt * 8, Np), jnp.float32)),
            grid_spec=pltpu.PrefetchScalarGridSpec(
                num_scalar_prefetch=0, grid=grid,
                in_specs=[a_spec, b_spec],
                out_specs=(o_spec,
                           pl.BlockSpec((8, Np), lambda m, k: (m, 0)),
                           pl.BlockSpec((8, Np), lambda m, k: (m, 0)))),
            compiler_params=_compiler_params(("parallel", "arbitrary"), vmem_bytes),
        )(a_p, b_p)
        # the 8 rows per M-tile are identical copies of that tile's column sum
        col_sum = jnp.sum(psum[0::8, :], axis=0)
        col_sq = jnp.sum(psq[0::8, :], axis=0)
        return out_p, col_sum, col_sq

    out_bytes = jnp.dtype(out_dtype).itemsize
    vmem_bytes = (2 * TM * TK * 2 + 2 * TK * Np * 2 + 2 * TM * Np * out_bytes
                  + TM * Np * 4 + 2 * Np * 4)
    bias_v = bias if bias is not None else jnp.zeros((N,), jnp.float32)
    bias_p = jnp.zeros((1, Np), jnp.float32).at[0, :N].set(bias_v.astype(jnp.float32))
    out_p = pl.pallas_call(
        _gemm_bias_act_kernel(apply_act),
        out_shape=jax.ShapeDtypeStruct((Mp, Np), out_dtype),
        grid_spec=pltpu.PrefetchScalarGridSpec(
            num_scalar_prefetch=0, grid=grid,
            in_specs=[a_spec, b_spec, pl.BlockSpec((1, Np), lambda m, k: (0, 0))],
            out_specs=o_spec,
            scratch_shapes=[pltpu.VMEM((TM, Np), jnp.float32)]),
        compiler_params=_compiler_params(("parallel", "arbitrary"), vmem_bytes),
    )(a_p, b_p, bias_p)
    return out_p


# ----------------------------------------------------------------------------
# Pallas kernel 2: gridded per-column affine + LeakyReLU (BatchNorm apply),
# bf16 output (its only consumer is the next conv's bf16 im2col).
# ----------------------------------------------------------------------------
def _affine_lrelu_kernel(x_ref, scale_ref, shift_ref, o_ref):
    y = x_ref[...] * scale_ref[...] + shift_ref[...]
    o_ref[...] = jnp.where(y >= 0.0, y, 0.2 * y).astype(o_ref.dtype)


def affine_lrelu_padded_pallas(x_p, scale, shift):
    """x_p: padded (Mp,Np) f32; scale/shift: (N,) -> lrelu(x*scale+shift) (padded bf16)."""
    Mp, Np = x_p.shape
    N = scale.shape[0]
    TM = _pick_tile_rows(Mp)
    scale_p = jnp.zeros((1, Np), jnp.float32).at[0, :N].set(scale.astype(jnp.float32))
    shift_p = jnp.zeros((1, Np), jnp.float32).at[0, :N].set(shift.astype(jnp.float32))
    vmem_bytes = 2 * TM * Np * 4 + 2 * TM * Np * 2 + 4 * Np * 4
    return pl.pallas_call(
        _affine_lrelu_kernel,
        out_shape=jax.ShapeDtypeStruct((Mp, Np), jnp.bfloat16),
        grid_spec=pltpu.PrefetchScalarGridSpec(
            num_scalar_prefetch=0, grid=(Mp // TM,),
            in_specs=[pl.BlockSpec((TM, Np), lambda m: (m, 0)),
                      pl.BlockSpec((1, Np), lambda m: (0, 0)),
                      pl.BlockSpec((1, Np), lambda m: (0, 0))],
            out_specs=pl.BlockSpec((TM, Np), lambda m: (m, 0))),
        compiler_params=_compiler_params(("parallel",), vmem_bytes),
    )(x_p, scale_p, shift_p)


# ----------------------------------------------------------------------------
# Pallas kernel 3: tiled elementwise-then-sum reductions (means outside)
# ----------------------------------------------------------------------------
_RED_TILE_ROWS = 256   # (256,128) f32 tile = 128 KiB per input per grid step


@functools.lru_cache(maxsize=None)
def _make_sum_kernel(fn):
    def kernel(x_ref, o_ref):
        @pl.when(pl.program_id(0) == 0)
        def _init():
            o_ref[...] = jnp.zeros_like(o_ref)

        o_ref[...] += jnp.sum(fn(x_ref[...])).reshape(1, 1)

    return kernel


def _absdiff_sum_kernel(a_ref, b_ref, o_ref):
    @pl.when(pl.program_id(0) == 0)
    def _init():
        o_ref[...] = jnp.zeros_like(o_ref)

    o_ref[...] += jnp.sum(jnp.abs(a_ref[...] - b_ref[...])).reshape(1, 1)


def _pad_tiles(x, pad_value):
    x = jnp.asarray(x, jnp.float32).reshape(-1)
    n = x.shape[0]
    tile = _RED_TILE_ROWS * 128
    npad = _round_up(max(n, tile), tile)
    xp = jnp.pad(x, (0, npad - n), constant_values=pad_value).reshape(npad // 128, 128)
    return xp, n, npad // tile


def _reduce_mean(x, fn, pad_value):
    """mean(fn(x)) over all elements; fn(pad_value) must equal 0."""
    xp, n, num_tiles = _pad_tiles(x, pad_value)
    vmem_bytes = 4 * _RED_TILE_ROWS * 128 * 4
    s = pl.pallas_call(
        _make_sum_kernel(fn),
        out_shape=jax.ShapeDtypeStruct((1, 1), jnp.float32),
        grid_spec=pltpu.PrefetchScalarGridSpec(
            num_scalar_prefetch=0, grid=(num_tiles,),
            in_specs=[pl.BlockSpec((_RED_TILE_ROWS, 128), lambda t: (t, 0))],
            out_specs=pl.BlockSpec((1, 1), lambda t: (0, 0))),
        compiler_params=_compiler_params(("arbitrary",), vmem_bytes),
    )(xp)
    return s[0, 0] / n


def mean_abs_diff_pallas(a, b):
    ap, n, num_tiles = _pad_tiles(a, 0.0)
    bp, _, _ = _pad_tiles(b, 0.0)
    vmem_bytes = 8 * _RED_TILE_ROWS * 128 * 4
    s = pl.pallas_call(
        _absdiff_sum_kernel,
        out_shape=jax.ShapeDtypeStruct((1, 1), jnp.float32),
        grid_spec=pltpu.PrefetchScalarGridSpec(
            num_scalar_prefetch=0, grid=(num_tiles,),
            in_specs=[pl.BlockSpec((_RED_TILE_ROWS, 128), lambda t: (t, 0)),
                      pl.BlockSpec((_RED_TILE_ROWS, 128), lambda t: (t, 0))],
            out_specs=pl.BlockSpec((1, 1), lambda t: (0, 0))),
        compiler_params=_compiler_params(("arbitrary",), vmem_bytes),
    )(ap, bp)
    return s[0, 0] / n


# module-level elementwise fns -> stable objects so kernels are cache-hits
def _fn_identity(v): return v
def _fn_relu_one_minus(v): return jnp.maximum(1.0 - v, 0.0)
def _fn_relu_one_plus(v): return jnp.maximum(1.0 + v, 0.0)
def _fn_softplus_neg(v): return jax.nn.softplus(-v)
def _fn_softplus_pos(v): return jax.nn.softplus(v)


def mean_pallas(x):
    return _reduce_mean(x, _fn_identity, pad_value=0.0)


# ----------------------------------------------------------------------------
# GAN discriminator losses (reductions in Pallas)
# ----------------------------------------------------------------------------
def hinge_d_loss(logits_real, logits_rec, logits_fake):
    loss_real = _reduce_mean(logits_real, _fn_relu_one_minus, 1e9)
    loss_rec = _reduce_mean(logits_rec, _fn_relu_one_plus, -1e9)
    loss_fake = _reduce_mean(logits_fake, _fn_relu_one_plus, -1e9)
    d_loss = loss_real * 0.5 + (loss_rec + loss_fake) * 0.25
    return d_loss, loss_real, loss_rec, loss_fake


def vanilla_d_loss(logits_real, logits_rec, logits_fake):
    loss_real = _reduce_mean(logits_real, _fn_softplus_neg, 1e9)
    loss_rec = _reduce_mean(logits_rec, _fn_softplus_pos, -1e9)
    loss_fake = _reduce_mean(logits_fake, _fn_softplus_pos, -1e9)
    d_loss = loss_real * 0.5 + (loss_rec + loss_fake) * 0.25
    return d_loss, loss_real, loss_rec, loss_fake


# ----------------------------------------------------------------------------
# NLayerDiscriminator (PatchGAN, n_layers=3, ndf=64) built on the Pallas GEMM
# ----------------------------------------------------------------------------
def _im2col(x_nhwc, kh, kw, stride, pad):
    """Zero-pad, extract kh*kw taps, flatten to (N*Hout*Wout, kh*kw*Cin) in bf16."""
    n, h, w, cin = x_nhwc.shape
    hout = (h + 2 * pad - kh) // stride + 1
    wout = (w + 2 * pad - kw) // stride + 1
    xp = jnp.pad(x_nhwc.astype(jnp.bfloat16), ((0, 0), (pad, pad), (pad, pad), (0, 0)))
    taps = []
    for ki in range(kh):
        for kj in range(kw):
            taps.append(xp[:, ki:ki + stride * hout:stride,
                           kj:kj + stride * wout:stride, :])
    # tap-major K layout: no transpose of the big patch tensor is required
    a = jnp.stack(taps, axis=3).reshape(n * hout * wout, kh * kw * cin)
    return a, (n, hout, wout)


def _weight_to_gemm(w_oihw):
    # K ordering (ki, kj, cin) to match the tap-major im2col layout above.
    cout, cin, kh, kw = w_oihw.shape
    return jnp.transpose(w_oihw, (2, 3, 1, 0)).reshape(kh * kw * cin, cout)


def conv2d_bias_act_pallas(x_nhwc, w_oihw, bias, stride, apply_act, pad=1,
                           out_dtype=jnp.float32):
    cout, _, kh, kw = w_oihw.shape
    a, (n, hout, wout) = _im2col(x_nhwc, kh, kw, stride, pad)
    b = _weight_to_gemm(w_oihw)
    out_p = conv_gemm_pallas(a, b, bias=bias, apply_act=apply_act,
                             out_dtype=out_dtype)
    m = n * hout * wout
    return out_p[:m, :cout].reshape(n, hout, wout, cout)


def conv2d_bn_lrelu_pallas(x_nhwc, w_oihw, gamma, beta, stride, pad=1, eps=1e-5):
    """Conv (no bias) -> BatchNorm2d (training-mode batch stats) -> LeakyReLU(0.2).

    Per-column sum / sum-of-squares are fused into the conv-GEMM epilogue (f32),
    so the conv output is only re-read once (by the affine+LeakyReLU pass, which
    emits bf16 for the next layer's im2col).
    """
    cout, _, kh, kw = w_oihw.shape
    a, (n, hout, wout) = _im2col(x_nhwc, kh, kw, stride, pad)
    b = _weight_to_gemm(w_oihw)
    out_p, col_sum, col_sq = conv_gemm_pallas(a, b, emit_stats=True)
    m = n * hout * wout            # zero-padded M rows contribute 0 to both sums
    mean = col_sum[:cout] / m
    var = jnp.maximum(col_sq[:cout] / m - mean * mean, 0.0)  # biased, as torch BN fwd
    scale = gamma / jnp.sqrt(var + eps)
    shift = beta - mean * scale
    y_p = affine_lrelu_padded_pallas(out_p, scale, shift)
    return y_p[:m, :cout].reshape(n, hout, wout, cout)


def init_discriminator_params(key, input_nc=3, ndf=64, n_layers=3):
    """weights_init: Conv ~ N(0, 0.02); BatchNorm weight ~ N(1, 0.02), bias 0."""
    chans = [input_nc, ndf] + [ndf * min(2 ** n, 8) for n in range(1, n_layers + 1)]
    params = {}
    keys = jax.random.split(key, 2 * (n_layers + 2))
    k = 0
    # conv0 (with bias, no norm)
    params["w0"] = 0.02 * jax.random.normal(keys[k], (chans[1], chans[0], 4, 4)); k += 1
    params["b0"] = jnp.zeros((chans[1],), jnp.float32)
    # conv1..conv_{n_layers} (no bias, BatchNorm)
    for i in range(1, n_layers + 1):
        params[f"w{i}"] = 0.02 * jax.random.normal(
            keys[k], (chans[i + 1], chans[i], 4, 4)); k += 1
        params[f"gamma{i}"] = 1.0 + 0.02 * jax.random.normal(keys[k], (chans[i + 1],)); k += 1
        params[f"beta{i}"] = jnp.zeros((chans[i + 1],), jnp.float32)
    # final conv (with bias)
    params["w_out"] = 0.02 * jax.random.normal(keys[k], (1, chans[-1], 4, 4)); k += 1
    params["b_out"] = jnp.zeros((1,), jnp.float32)
    # hidden Linear(1,1,bias=False) used in the disabled-disc branch
    params["w_hidden"] = 0.02 * jax.random.normal(keys[k], (1, 1))
    params["n_layers"] = n_layers
    return params


def nlayer_discriminator(params, x_nchw):
    n_layers = params["n_layers"]
    x = jnp.transpose(x_nchw.astype(jnp.float32), (0, 2, 3, 1))  # -> NHWC
    # conv0 output feeds a bf16 GEMM next, so emit bf16 (identical values to
    # f32-then-cast; halves intermediate HBM traffic).
    x = conv2d_bias_act_pallas(x, params["w0"], params["b0"], stride=2,
                               apply_act=True, out_dtype=jnp.bfloat16)
    for i in range(1, n_layers + 1):
        stride = 2 if i < n_layers else 1
        x = conv2d_bn_lrelu_pallas(x, params[f"w{i}"], params[f"gamma{i}"],
                                   params[f"beta{i}"], stride=stride)
    x = conv2d_bias_act_pallas(x, params["w_out"], params["b_out"],
                               stride=1, apply_act=False, out_dtype=jnp.float32)
    return jnp.transpose(x, (0, 3, 1, 2)).astype(jnp.float32)  # NCHW logits


# ----------------------------------------------------------------------------
# VQLPIPSWithDiscriminator.forward
# ----------------------------------------------------------------------------
class VQLPIPSWithDiscriminatorPallas:
    def __init__(self, disc_start, codebook_weight=1.0, pixelloss_weight=1.0,
                 kl_weight=1.0, disc_num_layers=3, disc_in_channels=3,
                 disc_factor=1.0, disc_weight=1.0, perceptual_weight=1.0,
                 style_weight=0.0, disc_conditional=False, disc_ndf=64,
                 disc_loss="hinge", seed=0):
        assert disc_loss in ["hinge", "vanilla"]
        self.codebook_weight = codebook_weight
        self.pixel_weight = pixelloss_weight
        self.kl_weight = kl_weight
        self.start_kl = False
        self.perceptual_weight = perceptual_weight
        self.style_weight = style_weight
        self.discriminator_iter_start = disc_start
        self.disc_factor = disc_factor
        self.discriminator_weight = disc_weight
        self.disc_conditional = disc_conditional
        self.disc_loss = hinge_d_loss if disc_loss == "hinge" else vanilla_d_loss
        self.params = init_discriminator_params(
            jax.random.PRNGKey(seed), input_nc=disc_in_channels,
            ndf=disc_ndf, n_layers=disc_num_layers)

    def forward(self, codebook_loss, latent_var, latent_mean, inputs,
                reconstructions, fake, optimizer_idx, global_step,
                last_layer=None, cond=None, split="train"):
        assert cond is None and not self.disc_conditional
        disc_factor = adopt_weight(self.disc_factor, global_step,
                                   threshold=self.discriminator_iter_start)

        if optimizer_idx == 0:
            rec_loss = mean_abs_diff_pallas(inputs, reconstructions)
            nll_loss = self.pixel_weight * rec_loss
            # TODO(synk): LPIPSWithStyle perceptual/style loss (pretrained VGG) not reproducible here.
            p_loss = jnp.float32(0.0)
            s_loss = jnp.float32(0.0)
            nll_loss = nll_loss + self.perceptual_weight * (p_loss + self.style_weight * s_loss)
            # TODO(synk): kl_loss() definition not supplied; standard scalar Gaussian KL used.
            lv = jnp.float32(latent_var)
            lm = jnp.float32(latent_mean)
            latent_kl_loss = 0.5 * (lm ** 2 + lv ** 2 - jnp.log(lv ** 2 + 1e-8) - 1.0)
            if float(latent_var) >= 1.0:
                self.start_kl = True
            kl_w = self.kl_weight if self.start_kl else 0.0
            loss = nll_loss + self.codebook_weight * jnp.float32(codebook_loss) + kl_w * latent_kl_loss

            if disc_factor > 0:
                # Separate discriminator calls are kept on purpose: training-mode
                # BatchNorm uses per-call batch statistics, so batching rec+fake
                # into one call would change the logits (forward semantics).
                logits_rec = nlayer_discriminator(self.params, reconstructions)
                g_rec_loss = -mean_pallas(logits_rec)
                if fake is not None:
                    logits_fake = nlayer_discriminator(self.params, fake)
                    g_fake_loss = -mean_pallas(logits_fake)
                else:
                    g_fake_loss = jnp.float32(0.0)
                # TODO(synk): adaptive weight needs grads w.r.t. last_layer; eval fallback (zeros).
                adv_weight = jnp.float32(0.0)
                adv_fake_weight = jnp.float32(0.0)
                loss = loss + disc_factor * adv_weight * (g_rec_loss + adv_fake_weight * g_fake_loss)
            else:
                adv_weight = adv_fake_weight = g_rec_loss = g_fake_loss = jnp.float32(0.0)

            loss = jnp.mean(loss)
            log = {
                f"{split}_supervised/quant_loss": jnp.float32(codebook_loss),
                f"{split}_supervised/nll_loss": nll_loss,
                f"{split}_supervised/rec_loss": rec_loss,
                f"{split}_supervised/p_loss": p_loss,
                f"{split}_supervised/kl_loss": latent_kl_loss,
                f"{split}_stat/quant_mean": lm,
                f"{split}_stat/quant_std": lv ** 2,
                f"{split}_total/total_loss": loss,
                f"{split}_supervised/style_loss": s_loss,
            }
            if fake is not None:
                log.update({
                    f"{split}_adversarial_weight/disc_factor": jnp.float32(disc_factor),
                    f"{split}_adversarial_weight/adv_weight": adv_weight,
                    f"{split}_adversarial_weight/d_fake_weight": adv_fake_weight,
                    f"{split}_adversarial_G/g_rec_loss": g_rec_loss,
                    f"{split}_adversarial_G/g_fake_loss": g_fake_loss,
                })
            return loss, log

        if optimizer_idx == 1:
            if disc_factor > 0:
                logits_real = nlayer_discriminator(self.params, inputs)
                logits_rec = nlayer_discriminator(self.params, reconstructions)
                if fake is not None:
                    logits_fake = nlayer_discriminator(self.params, fake)
                else:
                    logits_fake = jnp.float32(1.0)
                d_loss, d_real, d_rec, d_fake = self.disc_loss(logits_real, logits_rec, logits_fake)
                d_loss = d_loss * disc_factor
            else:
                d_loss = jnp.zeros((1, 1), jnp.float32)
                d_loss = d_loss + 0.0 * (d_loss @ self.params["w_hidden"])
                d_real = d_rec = d_fake = jnp.float32(0.0)
            log = {}
            if fake is not None:
                log = {
                    f"{split}_adversarial_D/disc_loss": d_loss,
                    f"{split}_adversarial_D/disc_loss_real": d_real,
                    f"{split}_adversarial_D/disc_loss_fake": d_fake,
                    f"{split}_adversarial_D/disc_loss_rec": d_rec,
                }
            return d_loss, log


# ----------------------------------------------------------------------------
# main
# ----------------------------------------------------------------------------
if __name__ == "__main__":
    key = jax.random.PRNGKey(0)
    k1, k2, k3 = jax.random.split(key, 3)
    B, C, H, W = 2, 3, 32, 32  # 32x32 so the 5-conv PatchGAN keeps positive spatial size
    inputs = jax.random.normal(k1, (B, C, H, W), jnp.float32)
    reconstructions = jax.random.normal(k2, (B, C, H, W), jnp.float32)
    fake = jax.random.normal(k3, (B, C, H, W), jnp.float32)

    module = VQLPIPSWithDiscriminatorPallas(disc_start=0, disc_in_channels=3,
                                            disc_num_layers=3, disc_ndf=64,
                                            disc_loss="hinge", seed=0)

    codebook_loss = 0.1
    latent_var = 1.2
    latent_mean = 0.05

    loss_g, log_g = module.forward(codebook_loss, latent_var, latent_mean,
                                   inputs, reconstructions, fake,
                                   optimizer_idx=0, global_step=10)
    loss_d, log_d = module.forward(codebook_loss, latent_var, latent_mean,
                                   inputs, reconstructions, fake,
                                   optimizer_idx=1, global_step=10)

    jax.block_until_ready((loss_g, loss_d, log_g, log_d))
    print("KERNEL_OK")
</pallas_src>

<mosaic_0001>
module attributes {stable_mosaic.version = 11 : i64} {
  func.func @_absdiff_sum_kernel(%arg0: i32, %arg1: memref<256x128xf32, #tpu.memory_space<vmem>>, %arg2: memref<256x128xf32, #tpu.memory_space<vmem>>, %arg3: memref<1x1xf32, #tpu.memory_space<vmem>>) attributes {dimension_semantics = [#tpu.dimension_semantics<arbitrary>], iteration_bounds = array<i64: 1>, scalar_prefetch = 0 : i64, scratch_operands = 0 : i64, tpu.core_type = #tpu.core_type<tc>, window_params = [{transform_indices = @transform_0, window_bounds = array<i64: 256, 128>}, {transform_indices = @transform_1, window_bounds = array<i64: 256, 128>}, {pipeline_mode = #tpu.pipeline_mode<synchronous>, transform_indices = @transform_2, window_bounds = array<i64: 1, 1>}]} {
    %c0_i32 = arith.constant 0 : i32
    %0 = arith.cmpi eq, %arg0, %c0_i32 : i32
    %1 = arith.extui %0 : i1 to i32
    %c0_i32_0 = arith.constant 0 : i32
    %2 = arith.cmpi ne, %1, %c0_i32_0 : i32
    scf.if %2 {
      %cst_8 = arith.constant 0.000000e+00 : f32
      %15 = vector.broadcast %cst_8 : f32 to vector<1x1xf32>
      %c0_9 = arith.constant 0 : index
      %c0_10 = arith.constant 0 : index
      %16 = vector.load %arg3[%c0_9, %c0_10] : memref<1x1xf32, #tpu.memory_space<vmem>>, vector<1x1xf32>
      tpu.vector_store %arg3[%c0_9, %c0_10], %15 {strides = array<i32>} : memref<1x1xf32, #tpu.memory_space<vmem>>, vector<1x1xf32>,
    } else {
    }
    %c0 = arith.constant 0 : index
    %c0_1 = arith.constant 0 : index
    %3 = vector.load %arg3[%c0, %c0_1] : memref<1x1xf32, #tpu.memory_space<vmem>>, vector<1x1xf32>
    %c0_2 = arith.constant 0 : index
    %c0_3 = arith.constant 0 : index
    %4 = vector.load %arg1[%c0_2, %c0_3] : memref<256x128xf32, #tpu.memory_space<vmem>>, vector<256x128xf32>
    %c0_4 = arith.constant 0 : index
    %c0_5 = arith.constant 0 : index
    %5 = vector.load %arg2[%c0_4, %c0_5] : memref<256x128xf32, #tpu.memory_space<vmem>>, vector<256x128xf32>
    %6 = arith.subf %4, %5 : vector<256x128xf32>
    %7 = math.absf %6 : vector<256x128xf32>
    %8 = vector.shape_cast %7 : vector<256x128xf32> to vector<1x256x128xf32>
    %cst = arith.constant dense<0.000000e+00> : vector<1xf32>
    %9 = vector.multi_reduction <add>, %8, %cst [1, 2] : vector<1x256x128xf32> to vector<1xf32>
    %10 = vector.shape_cast %9 : vector<1xf32> to vector<1x1x1xf32>
    %11 = vector.extract %10[0, 0, 0] : f32 from vector<1x1x1xf32>
    %12 = vector.broadcast %11 : f32 to vector<1x1xf32>
    %13 = arith.addf %3, %12 : vector<1x1xf32>
    %c0_6 = arith.constant 0 : index
    %c0_7 = arith.constant 0 : index
    %14 = vector.load %arg3[%c0_6, %c0_7] : memref<1x1xf32, #tpu.memory_space<vmem>>, vector<1x1xf32>
    tpu.vector_store %arg3[%c0_6, %c0_7], %13 {strides = array<i32>} : memref<1x1xf32, #tpu.memory_space<vmem>>, vector<1x1xf32>,
    return
  }
  func.func @transform_0(%arg0: i32) -> (i32, i32) {
    %c0_i32 = arith.constant 0 : i32
    %c0_i32_0 = arith.constant 0 : i32
    return %arg0, %c0_i32 : i32, i32
  }
  func.func @transform_1(%arg0: i32) -> (i32, i32) {
    %c0_i32 = arith.constant 0 : i32
    %c0_i32_0 = arith.constant 0 : i32
    return %arg0, %c0_i32 : i32, i32
  }
  func.func @transform_2(%arg0: i32) -> (i32, i32) {
    %c0_i32 = arith.constant 0 : i32
    %c0_i32_0 = arith.constant 0 : i32
    %c0_i32_1 = arith.constant 0 : i32
    return %c0_i32, %c0_i32_0 : i32, i32
  }
}

</mosaic_0001>

<bundles_post_ra>
// kernel: tpu_custom_call.1
= control target key start
LH: loop header
LB: loop body
LE: loop exit
PB: predicated region body
PF: predicated region fallthrough
CT: control target
= control target key end

     0   :  { %7 = vsyncpa [#allocation3], 0  ;;  %s341_s0 = inlined_call_operand.hbm [shape: f32[256,128], index: 0, kind: input, shape index: {}]   ;;  %s342_s1 = inlined_call_operand.hbm [shape: f32[256,128], index: 1, kind: input, shape index: {}]   ;;  %s343_s2 = inlined_call_operand.hbm [shape: f32[1,1], index: 2, kind: output, shape index: {}]  }
   0x1   :  { %8 = vsyncpa [#allocation6], 0 }
   0x2   :  { %9 = vsyncpa [#allocation4], 0  ;;  %s309_s9 = smov [#allocation2]  }
   0x3   :  { %s15_s10 = sshll.u32 %s309_s9, 4  ;;  %s16_s10 = int_to_ptr.vmem [resolvable:$true] %s15_s10 }
   0x4   :  { %s251_s11 = scalar_lea.vmem %s16_s10, 4096  ;;  %p256_p1 = scmp.lt.s32.totalorder %s16_s10, %s16_s10 }
   0x5   :  { %p252_p0 = scmp.ne.s32.totalorder %s16_s10, %s251_s11  ;;  %p257_p2 = scmp.lt.s32.totalorder %s251_s11, %s251_s11 }
   0x7   :  { %p258_p3 = por %p257_p2, %p256_p1 }
   0x9   :  { %p259_p4 = pnand %p258_p3, %p252_p0 }
   0xb   :  { %262 = shalt.err (!%p259_p4)
}
   0xc   :  { %s310_s12 = smov 128   ;;  %s311_s13 = smov 8  }
   0xd   :  { %21 = dma.hbm_to_vmem [thread:$0]  %s341_s0, 4096, %s16_s10, [#allocation3], %s310_s12, %s310_s12, %s311_s13  }
   0xe   :  { %s312_s16 = smov [#allocation5]  }
   0xf   :  { %s27_s17 = sshll.u32 %s312_s16, 4  ;;  %s28_s17 = int_to_ptr.vmem [resolvable:$true] %s27_s17 }
  0x10   :  { %s271_s18 = scalar_lea.vmem %s28_s17, 4096  ;;  %p276_p6 = scmp.lt.s32.totalorder %s28_s17, %s28_s17 }
  0x11   :  { %p272_p5 = scmp.ne.s32.totalorder %s28_s17, %s271_s18  ;;  %p277_p7 = scmp.lt.s32.totalorder %s271_s18, %s271_s18 }
  0x13   :  { %p278_p8 = por %p277_p7, %p276_p6 }
  0x15   :  { %p279_p9 = pnand %p278_p8, %p272_p5 }
  0x17   :  { %282 = shalt.err (!%p279_p9)
}
  0x18   :  { %33 = dma.hbm_to_vmem [thread:$0]  %s342_s1, 4096, %s28_s17, [#allocation6], %s310_s12, %s310_s12, %s311_s13  }
  0x19   :  { %303 = dma.done.wait [#allocation3], 4096  }
  0x1a   :  { %304 = vsyncadd [#allocation3], 4294963200 }
  0x1b   :  { %305 = dma.done.wait [#allocation6], 4096  }
  0x1c   :  { %306 = vsyncadd [#allocation6], 4294963200  ;;  %v47_v0 = vld [vmem:[#allocation2] sm:$0xff]  ;;  %v48_v1 = vld [vmem:[#allocation2 + $0x8] sm:$0xff]  ;;  %vm44_vm0 = vcmask 0   ;;  %s314_s0 = smov [#allocation7]  }
  0x1d   :  { %v79_v2 = vld [vmem:[#allocation5] sm:$0xff]  ;;  %v80_v3 = vld [vmem:[#allocation5 + $0x8] sm:$0xff]  ;;  %v49_v4 = vld [vmem:[#allocation2 + $0x10] sm:$0xff]  ;;  %s225_s1 = sshll.u32 %s314_s0, 4  ;;  %s226_s1 = int_to_ptr.vmem [resolvable:$true] %s225_s1 }
  0x1e   :  { %v81_v5 = vld [vmem:[#allocation5 + $0x10] sm:$0xff]  ;;  %v111_v6 = vsub.f32 %v47_v0, %v79_v2  ;;  %v112_v7 = vsub.f32 %v48_v1, %v80_v3  ;;  %v50_v8 = vld [vmem:[#allocation2 + $0x18] sm:$0xff]  ;;  %v51_v11 = vld [vmem:[#allocation2 + $0x20] sm:$0xff]  ;;  %s283_s22 = scalar_lea.vmem %s226_s1, 16  ;;  %s287_s23 = scalar_lea.vmem %s226_s1, 32 }
  0x1f   :  { %v82_v9 = vld [vmem:[#allocation5 + $0x18] sm:$0xff]  ;;  %v113_v10 = vsub.f32 %v49_v4, %v81_v5  ;;  %v83_v12 = vld [vmem:[#allocation5 + $0x20] sm:$0xff]  ;;  %v52_v16 = vld [vmem:[#allocation2 + $0x28] sm:$0xff]  ;;  %p284_p10 = scmp.ne.s32.totalorder %s226_s1, %s283_s22  ;;  %p288_p11 = scmp.lt.s32.totalorder %s226_s1, %s226_s1 }
  0x20   :  { %v114_v13 = vsub.f32 %v50_v8, %v82_v9  ;;  %v143_v14 = vand.u32 2147483647, %v111_v6  ;;  %v144_v15 = vand.u32 2147483647, %v112_v7  ;;  %v84_v17 = vld [vmem:[#allocation5 + $0x28] sm:$0xff]  ;;  %v115_v18 = vsub.f32 %v51_v11, %v83_v12  ;;  %v53_v20 = vld [vmem:[#allocation2 + $0x30] sm:$0xff]  ;;  %p289_p12 = scmp.lt.s32.totalorder %s287_s23, %s283_s22 }
  0x21   :  { %v145_v19 = vand.u32 2147483647, %v113_v10  ;;  %v85_v21 = vld [vmem:[#allocation5 + $0x30] sm:$0xff]  ;;  %v116_v22 = vsub.f32 %v52_v16, %v84_v17  ;;  %v54_v25 = vld [vmem:[#allocation2 + $0x38] sm:$0xff]  ;;  %v55_v30 = vld [vmem:[#allocation2 + $0x40] sm:$0xff] }
  0x22   :  { %v146_v23 = vand.u32 2147483647, %v114_v13  ;;  %v175_v24 = vadd.f32 %v144_v15, %v143_v14  ;;  %v86_v26 = vld [vmem:[#allocation5 + $0x38] sm:$0xff]  ;;  %v117_v27 = vsub.f32 %v53_v20, %v85_v21  ;;  %v147_v28 = vand.u32 2147483647, %v115_v18  ;;  %v87_v31 = vld [vmem:[#allocation5 + $0x40] sm:$0xff]  ;;  %p290_p13 = por %p289_p12, %p288_p11 }
  0x23   :  { %v118_v32 = vsub.f32 %v54_v25, %v86_v26  ;;  %v148_v33 = vand.u32 2147483647, %v116_v22  ;;  %v56_v35 = vld [vmem:[#allocation2 + $0x48] sm:$0xff]  ;;  %v119_v37 = vsub.f32 %v55_v30, %v87_v31  ;;  %v57_v40 = vld [vmem:[#allocation2 + $0x50] sm:$0xff]  ;;  %v58_v45 = vld [vmem:[#allocation2 + $0x58] sm:$0xff] }
  0x24   :  { %v176_v29 = vadd.f32 %v175_v24, %v145_v19  ;;  %v88_v36 = vld [vmem:[#allocation5 + $0x48] sm:$0xff]  ;;  %v149_v38 = vand.u32 2147483647, %v117_v27  ;;  %v89_v41 = vld [vmem:[#allocation5 + $0x50] sm:$0xff]  ;;  %v90_v46 = vld [vmem:[#allocation5 + $0x58] sm:$0xff]  ;;  %p291_p0 = pnand %p290_p13, %p284_p10 }
  0x25   :  { %v120_v42 = vsub.f32 %v56_v35, %v88_v36  ;;  %v150_v43 = vand.u32 2147483647, %v118_v32  ;;  %v121_v47 = vsub.f32 %v57_v40, %v89_v41  ;;  %v151_v48 = vand.u32 2147483647, %v119_v37  ;;  %v59_v50 = vld [vmem:[#allocation2 + $0x60] sm:$0xff]  ;;  %v60_v55 = vld [vmem:[#allocation2 + $0x68] sm:$0xff] }
  0x26   :  { %v177_v34 = vadd.f32 %v176_v29, %v146_v23  ;;  %v91_v51 = vld [vmem:[#allocation5 + $0x60] sm:$0xff]  ;;  %v122_v52 = vsub.f32 %v58_v45, %v90_v46  ;;  %v92_v56 = vld [vmem:[#allocation5 + $0x68] sm:$0xff]  ;;  %v61_v60 = vld [vmem:[#allocation2 + $0x70] sm:$0xff] }
  0x27   :  { %v152_v53 = vand.u32 2147483647, %v120_v42  ;;  %v123_v57 = vsub.f32 %v59_v50, %v91_v51  ;;  %v153_v58 = vand.u32 2147483647, %v121_v47  ;;  %v93_v61 = vld [vmem:[#allocation5 + $0x70] sm:$0xff]  ;;  %v124_v62 = vsub.f32 %v60_v55, %v92_v56  ;;  %v62_v1 = vld [vmem:[#allocation2 + $0x78] sm:$0xff] }
  0x28   :  { %v178_v39 = vadd.f32 %v177_v34, %v147_v28  ;;  %v154_v63 = vand.u32 2147483647, %v122_v52  ;;  %v94_v2 = vld [vmem:[#allocation5 + $0x78] sm:$0xff]  ;;  %v125_v3 = vsub.f32 %v61_v60, %v93_v61  ;;  %v63_v6 = vld [vmem:[#allocation2 + $0x80] sm:$0xff]  ;;  %v64_v11 = vld [vmem:[#allocation2 + $0x88] sm:$0xff] }
  0x29   :  { %v155_v4 = vand.u32 2147483647, %v123_v57  ;;  %v95_v7 = vld [vmem:[#allocation5 + $0x80] sm:$0xff]  ;;  %v126_v8 = vsub.f32 %v62_v1, %v94_v2  ;;  %v156_v9 = vand.u32 2147483647, %v124_v62  ;;  %v96_v12 = vld [vmem:[#allocation5 + $0x88] sm:$0xff] }
  0x2a   :  { %v179_v44 = vadd.f32 %v178_v39, %v148_v33  ;;  %v127_v13 = vsub.f32 %v63_v6, %v95_v7  ;;  %v157_v14 = vand.u32 2147483647, %v125_v3  ;;  %v65_v16 = vld [vmem:[#allocation2 + $0x90] sm:$0xff]  ;;  %v128_v18 = vsub.f32 %v64_v11, %v96_v12  ;;  %v66_v21 = vld [vmem:[#allocation2 + $0x98] sm:$0xff]  ;;  %v67_v26 = vld [vmem:[#allocation2 + $0xa0] sm:$0xff] }
  0x2b   :  { %v97_v17 = vld [vmem:[#allocation5 + $0x90] sm:$0xff]  ;;  %v158_v19 = vand.u32 2147483647, %v126_v8  ;;  %v98_v22 = vld [vmem:[#allocation5 + $0x98] sm:$0xff]  ;;  %v99_v27 = vld [vmem:[#allocation5 + $0xa0] sm:$0xff] }
  0x2c   :  { %v180_v49 = vadd.f32 %v179_v44, %v149_v38  ;;  %v129_v23 = vsub.f32 %v65_v16, %v97_v17  ;;  %v159_v24 = vand.u32 2147483647, %v127_v13  ;;  %v130_v28 = vsub.f32 %v66_v21, %v98_v22  ;;  %v68_v31 = vld [vmem:[#allocation2 + $0xa8] sm:$0xff]  ;;  %v69_v36 = vld [vmem:[#allocation2 + $0xb0] sm:$0xff]  ;;  %v70_v41 = vld [vmem:[#allocation2 + $0xb8] sm:$0xff] }
  0x2d   :  { %v160_v29 = vand.u32 2147483647, %v128_v18  ;;  %v100_v32 = vld [vmem:[#allocation5 + $0xa8] sm:$0xff]  ;;  %v131_v33 = vsub.f32 %v67_v26, %v99_v27  ;;  %v101_v37 = vld [vmem:[#allocation5 + $0xb0] sm:$0xff]  ;;  %v102_v42 = vld [vmem:[#allocation5 + $0xb8] sm:$0xff] }
  0x2e   :  { %v181_v54 = vadd.f32 %v180_v49, %v150_v43  ;;  %v161_v34 = vand.u32 2147483647, %v129_v23  ;;  %v132_v38 = vsub.f32 %v68_v31, %v100_v32  ;;  %v162_v39 = vand.u32 2147483647, %v130_v28  ;;  %v71_v46 = vld [vmem:[#allocation2 + $0xc0] sm:$0xff]  ;;  %v72_v51 = vld [vmem:[#allocation2 + $0xc8] sm:$0xff] }
  0x2f   :  { %v133_v43 = vsub.f32 %v69_v36, %v101_v37  ;;  %v163_v44 = vand.u32 2147483647, %v131_v33  ;;  %v103_v47 = vld [vmem:[#allocation5 + $0xc0] sm:$0xff]  ;;  %v104_v52 = vld [vmem:[#allocation5 + $0xc8] sm:$0xff]  ;;  %v73_v56 = vld [vmem:[#allocation2 + $0xd0] sm:$0xff]  ;;  %v313_v31 = vmov 0.0  }
  0x30   :  { %v182_v59 = vadd.f32 %v181_v54, %v151_v48  ;;  %v134_v48 = vsub.f32 %v70_v41, %v102_v42  ;;  %v164_v49 = vand.u32 2147483647, %v132_v38  ;;  %v105_v57 = vld [vmem:[#allocation5 + $0xd0] sm:$0xff]  ;;  %v74_v61 = vld [vmem:[#allocation2 + $0xd8] sm:$0xff]  ;;  %v75_v2 = vld [vmem:[#allocation2 + $0xe0] sm:$0xff] }
  0x31   :  { %v165_v54 = vand.u32 2147483647, %v133_v43  ;;  %v106_v62 = vld [vmem:[#allocation5 + $0xd8] sm:$0xff]  ;;  %v107_v3 = vld [vmem:[#allocation5 + $0xe0] sm:$0xff]  ;;  %v76_v7 = vld [vmem:[#allocation2 + $0xe8] sm:$0xff] }
  0x32   :  { %v183_v0 = vadd.f32 %v182_v59, %v152_v53  ;;  %v135_v53 = vsub.f32 %v71_v46, %v103_v47  ;;  %v166_v59 = vand.u32 2147483647, %v134_v48  ;;  %v108_v8 = vld [vmem:[#allocation5 + $0xe8] sm:$0xff]  ;;  %v77_v12 = vld [vmem:[#allocation2 + $0xf0] sm:$0xff]  ;;  %v78_v17 = vld [vmem:[#allocation2 + $0xf8] sm:$0xff] }
  0x33   :  { %v109_v13 = vld [vmem:[#allocation5 + $0xf0] sm:$0xff]  ;;  %v110_v18 = vld [vmem:[#allocation5 + $0xf8] sm:$0xff]  ;;  %45 = vst.msk [vmem:[#allocation7] sm:$0x1] %vm44_vm0, %v313_v31 }
  0x34   :  { %v184_v5 = vadd.f32 %v183_v0, %v153_v58  ;;  %v136_v58 = vsub.f32 %v72_v51, %v104_v52  ;;  %v167_v0 = vand.u32 2147483647, %v135_v53  ;;  %v142_v22 = vsub.f32 %v78_v17, %v110_v18 }
  0x36   :  { %v185_v10 = vadd.f32 %v184_v5, %v154_v63  ;;  %v137_v63 = vsub.f32 %v73_v56, %v105_v57  ;;  %v168_v5 = vand.u32 2147483647, %v136_v58  ;;  %v174_v27 = vand.u32 2147483647, %v142_v22 }
  0x38   :  { %v186_v15 = vadd.f32 %v185_v10, %v155_v4  ;;  %v138_v4 = vsub.f32 %v74_v61, %v106_v62  ;;  %v169_v10 = vand.u32 2147483647, %v137_v63 }
  0x3a   :  { %v187_v20 = vadd.f32 %v186_v15, %v156_v9  ;;  %v139_v9 = vsub.f32 %v75_v2, %v107_v3  ;;  %v170_v15 = vand.u32 2147483647, %v138_v4 }
  0x3c   :  { %v188_v25 = vadd.f32 %v187_v20, %v157_v14  ;;  %v140_v14 = vsub.f32 %v76_v7, %v108_v8  ;;  %v171_v20 = vand.u32 2147483647, %v139_v9 }
  0x3e   :  { %v189_v30 = vadd.f32 %v188_v25, %v158_v19  ;;  %v141_v19 = vsub.f32 %v77_v12, %v109_v13  ;;  %v172_v23 = vand.u32 2147483647, %v140_v14 }
  0x40   :  { %v190_v35 = vadd.f32 %v189_v30, %v159_v24  ;;  %v173_v25 = vand.u32 2147483647, %v141_v19 }
  0x42   :  { %v191_v40 = vadd.f32 %v190_v35, %v160_v29 }
  0x44   :  { %v192_v45 = vadd.f32 %v191_v40, %v161_v34 }
  0x46   :  { %v193_v50 = vadd.f32 %v192_v45, %v162_v39  ;;  %v46_v39 = vld [vmem:[#allocation7] sm:$0x1] }
  0x48   :  { %v194_v55 = vadd.f32 %v193_v50, %v163_v44 }
  0x4a   :  { %v195_v60 = vadd.f32 %v194_v55, %v164_v49 }
  0x4c   :  { %v196_v1 = vadd.f32 %v195_v60, %v165_v54 }
  0x4e   :  { %v197_v6 = vadd.f32 %v196_v1, %v166_v59 }
  0x50   :  { %v198_v11 = vadd.f32 %v197_v6, %v167_v0 }
  0x52   :  { %v199_v16 = vadd.f32 %v198_v11, %v168_v5 }
  0x54   :  { %v200_v21 = vadd.f32 %v199_v16, %v169_v10 }
  0x56   :  { %v201_v24 = vadd.f32 %v200_v21, %v170_v15 }
  0x58   :  { %v202_v26 = vadd.f32 %v201_v24, %v171_v20 }
  0x5a   :  { %v203_v28 = vadd.f32 %v202_v26, %v172_v23 }
  0x5c   :  { %v204_v29 = vadd.f32 %v203_v28, %v173_v25 }
  0x5e   :  { %v205_v30 = vadd.f32 %v204_v29, %v174_v27 }
  0x60   :  { %206 = vadd.xlane.f32.xlu0 %v205_v30 }
  0xe9   :  { %v207_v32 = vpop.xlane.xlu0 %206 }
  0xea   :  { %v208_v33 = vrot.slane %v207_v32, 4 }
  0xec   :  { %v209_v34 = vadd.f32 %v208_v33, %v207_v32 }
  0xee   :  { %v210_v35 = vrot.slane %v209_v34, 2 }
  0xf0   :  { %v211_v36 = vadd.f32 %v210_v35, %v209_v34 }
  0xf2   :  { %v212_v37 = vrot.slane %v211_v36, 1 }
  0xf4   :  { %v213_v38 = vadd.f32 %v212_v37, %v211_v36 }
  0xf6   :  { %235 = vpush %v213_v38 }
 0x127   :  { %s236_s21 = spop %235 }
 0x128   :  { %v215_v40 = vstv %s236_s21 }
 0x129   :  { %v216_v41 = vadd.f32 %v215_v40, %v46_v39 }
 0x12b   :  { %218 = vst.msk [vmem:[#allocation7] sm:$0x1] %vm44_vm0, %v216_v41 }
 0x12c   :  { %294 = shalt.err (!%p291_p0)
}
 0x12d   :  { %228 = dma.vmem_to_hbm [thread:$0]  %s226_s1, 16, %s343_s2, [#allocation4]  }
 0x12e   :  { %307 = dma.done.wait [#allocation4], 16  }
 0x12f   :  { %308 = vsyncadd [#allocation4], 4294967280 }
 0x130   :  { %232 = vsyncpa [#allocation3], 1 }
 0x131   :  { %233 = vsyncpa [#allocation6], 1 }
 0x132   :  { %234 = vsyncpa [#allocation4], 1 }

</bundles_post_ra>
